<compile_context>
chip_gen: v7x
topology: tpu7x:2x2x1
jax: 0.10.0
libtpu: 0.0.40
codegen_flags: <defaults>
</compile_context>

<pallas_src>
import functools

import jax
import jax.numpy as jnp
from jax import lax
from jax.experimental import pallas as pl
from jax.experimental.pallas import tpu as pltpu


def _round_up(x, m):
    return ((x + m - 1) // m) * m


def _cdiv(a, b):
    return (a + b - 1) // b


def _nconv_kernel(at_ref, x_ref, o_ref):
    # at_ref: (W, V)  pre-transposed adjacency, VMEM-resident across grid steps
    #                 (contraction dim last on the MXU LHS -> no in-loop vxpose)
    # x_ref : (V, TM) lane-dense tile of xT
    # o_ref : (W, TM) lane-dense output tile (full-lane, unmasked stores)
    out = lax.dot_general(
        at_ref[...], x_ref[...],
        dimension_numbers=(((1,), (0,)), ((), ())),   # contract over V
        preferred_element_type=jnp.float32,
    )
    o_ref[...] = out.astype(o_ref.dtype)


@functools.partial(jax.jit, static_argnames=("tm", "compute_dtype"))
def nconv(x, A, *, tm=4096, compute_dtype=None):
    """x: (N, C, V, L), A: (V, W) -> (N, C, W, L).

    tm: requested lane-tile width (multiple of 128). 4096 is a good default on
        v6e/v7x; 1024-2048 is already near roofline on v5e.
    compute_dtype: optionally cast inputs (e.g. jnp.bfloat16) for the kernel;
        accumulation stays f32, output keeps x.dtype.
    """
    N, C, V, L = x.shape
    Va, W = A.shape
    assert Va == V
    M = N * C * L

    # Lane-dense layout for the kernel: contraction dim V leading, combined
    # batch*channel*time dim M trailing. One XLA relayout (candidate for input
    # fusion into the pallas_call below).
    xT = jnp.transpose(x, (2, 0, 1, 3)).reshape(V, M)
    A_T = jnp.transpose(A)                      # (W, V), tiny one-time relayout

    if compute_dtype is not None:
        xT = xT.astype(compute_dtype)
        A_T = A_T.astype(compute_dtype)

    # Tile M in 128-granular chunks (satisfies the (8,128) BlockSpec rule on
    # all generations). Shrink the tile so the grid covers M with <128 columns
    # of padding waste per grid step (instead of padding M up to a multiple of
    # the requested tm).
    m128 = _round_up(M, 128)
    tm_req = _round_up(min(tm, m128), 128)
    grid_m = _cdiv(m128, tm_req)
    tm_eff = _round_up(_cdiv(m128, grid_m), 128)
    m_pad = grid_m * tm_eff
    if m_pad != M:
        xT = jnp.pad(xT, ((0, 0), (0, m_pad - M)))

    # VMEM budget: x tile + out tile double-buffered + resident A^T. Only bump
    # the scoped-VMEM limit when the default (32 MiB) would be exceeded
    # (e.g. tm=8192); keep well under v7x's 64 MiB physical VMEM.
    in_isz = jnp.dtype(xT.dtype).itemsize
    out_isz = jnp.dtype(x.dtype).itemsize
    vmem_need = (2 * V * tm_eff * in_isz          # x tile, double-buffered
                 + 2 * W * tm_eff * out_isz       # out tile, double-buffered
                 + W * V * in_isz)                # resident A^T
    vmem_limit = None
    if vmem_need > 30 * 1024 * 1024:
        vmem_limit = min(_round_up(vmem_need + (4 << 20), 1 << 20), 48 << 20)

    cost = pl.CostEstimate(
        flops=2 * m_pad * V * W,
        transcendentals=0,
        bytes_accessed=in_isz * (m_pad * V + V * W) + out_isz * m_pad * W,
    )

    out = pl.pallas_call(
        _nconv_kernel,
        out_shape=jax.ShapeDtypeStruct((W, m_pad), x.dtype),
        grid_spec=pltpu.PrefetchScalarGridSpec(
            num_scalar_prefetch=0,
            grid=(grid_m,),
            in_specs=[
                pl.BlockSpec((W, V), lambda m: (0, 0)),        # A^T resident
                pl.BlockSpec((V, tm_eff), lambda m: (0, m)),   # xT tile
            ],
            out_specs=pl.BlockSpec((W, tm_eff), lambda m: (0, m)),
        ),
        compiler_params=pltpu.CompilerParams(
            # Independent M-tiles: megacore-shardable. If an xprof on v7x shows
            # one TensorCore idle, switch to pltpu.CORE_PARALLEL.
            dimension_semantics=("parallel",),
            # Let XLA fold the xT-producing relayout into the pallas_call input
            # (no-op if the fusion is not legal); A^T is tiny, keep it as-is.
            allow_input_fusion=[False, True],
            vmem_limit_bytes=vmem_limit,
        ),
        cost_estimate=cost,
    )(A_T, xT)

    # Back to NCWL (layout plumbing in XLA, single pass).
    out = out[:, :M].reshape(W, N, C, L)
    return jnp.transpose(out, (1, 2, 0, 3))


if __name__ == "__main__":
    key = jax.random.PRNGKey(0)
    kx, ka = jax.random.split(key)

    N, C, V, L = 2, 4, 16, 8  # batch, channels, num_nodes, seq_len
    x = jax.random.normal(kx, (N, C, V, L), dtype=jnp.float32)
    A = jax.random.normal(ka, (V, V), dtype=jnp.float32)  # adjacency (V, W), W == V

    out = nconv(x, A)
    out = jax.block_until_ready(out)

    # correctness check vs. plain-JAX einsum reference
    ref = jnp.einsum("ncvl,vw->ncwl", x, A)
    assert out.shape == ref.shape
    assert jnp.allclose(out, ref, atol=1e-5, rtol=1e-5)

    print("KERNEL_OK")
</pallas_src>

<mosaic_0001>
module attributes {stable_mosaic.version = 11 : i64} {
  func.func @_nconv_kernel(%arg0: i32, %arg1: memref<16x16xf32, #tpu.memory_space<vmem>>, %arg2: memref<16x128xf32, #tpu.memory_space<vmem>>, %arg3: memref<16x128xf32, #tpu.memory_space<vmem>>) attributes {dimension_semantics = [#tpu.dimension_semantics<parallel>], iteration_bounds = array<i64: 1>, scalar_prefetch = 0 : i64, scratch_operands = 0 : i64, tpu.core_type = #tpu.core_type<tc>, window_params = [{pipeline_mode = #tpu.pipeline_mode<synchronous>, transform_indices = @transform_0, window_bounds = array<i64: 16, 16>}, {transform_indices = @transform_1, window_bounds = array<i64: 16, 128>}, {transform_indices = @transform_2, window_bounds = array<i64: 16, 128>}]} {
    %c0 = arith.constant 0 : index
    %c0_0 = arith.constant 0 : index
    %0 = vector.load %arg1[%c0, %c0_0] : memref<16x16xf32, #tpu.memory_space<vmem>>, vector<16x16xf32>
    %c0_1 = arith.constant 0 : index
    %c0_2 = arith.constant 0 : index
    %1 = vector.load %arg2[%c0_1, %c0_2] : memref<16x128xf32, #tpu.memory_space<vmem>>, vector<16x128xf32>
    %cst = arith.constant dense<0.000000e+00> : vector<16x128xf32>
    %2 = tpu.matmul %0, %1, %cst {dimension_numbers = #tpu.dot_dimension_numbers<[1], [0], [0], [1], [0, 0, 1, 1], [], []>} : vector<16x16xf32>, vector<16x128xf32>, vector<16x128xf32> -> vector<16x128xf32>
    %c0_3 = arith.constant 0 : index
    %c0_4 = arith.constant 0 : index
    %3 = vector.load %arg3[%c0_3, %c0_4] : memref<16x128xf32, #tpu.memory_space<vmem>>, vector<16x128xf32>
    tpu.vector_store %arg3[%c0_3, %c0_4], %2 {strides = array<i32>} : memref<16x128xf32, #tpu.memory_space<vmem>>, vector<16x128xf32>,
    return
  }
  func.func @transform_0(%arg0: i32) -> (i32, i32) {
    %c0_i32 = arith.constant 0 : i32
    %c0_i32_0 = arith.constant 0 : i32
    %c0_i32_1 = arith.constant 0 : i32
    return %c0_i32, %c0_i32_0 : i32, i32
  }
  func.func @transform_1(%arg0: i32) -> (i32, i32) {
    %c0_i32 = arith.constant 0 : i32
    %c0_i32_0 = arith.constant 0 : i32
    return %c0_i32, %arg0 : i32, i32
  }
  func.func @transform_2(%arg0: i32) -> (i32, i32) {
    %c0_i32 = arith.constant 0 : i32
    %c0_i32_0 = arith.constant 0 : i32
    return %c0_i32, %arg0 : i32, i32
  }
}

</mosaic_0001>

<bundles_post_ra>
// kernel: nconv.2
= control target key start
LH: loop header
LB: loop body
LE: loop exit
PB: predicated region body
PF: predicated region fallthrough
CT: control target
= control target key end

     0   :  { %v14_v1 = vlaneseq  ;;  %vm35_vm0 = vcmask 130048   ;;  %s182_s0 = inlined_call_operand.vmem [shape: f32[16,16], index: 0, kind: input, shape index: {}]   ;;  %s183_s1 = inlined_call_operand.vmem [shape: f32[16,64], index: 1, kind: input, shape index: {}]   ;;  %s184_s2 = inlined_call_operand.<no memory space> [shape: f32[], index: 2, kind: input, shape index: {}]   ;;  %s185_s3 = inlined_call_operand.vmem [shape: f32[16,128], index: 3, kind: output, shape index: {}]  }
   0x1   :  { %v8_v0 = vstv %s184_s2  ;;  %v31_v2 = vld [vmem:[%s182_s0] sm:$0xff]  ;;  %v123_v5 = vld [vmem:[%s183_s1 + $0x8] sm:$0xff] }
   0x2   :  { %134 = vmatprep.mubr.msk.f32.mxu0 %vm35_vm0, %v31_v2  ;;  %v13_v3 = vld [vmem:[%s183_s1] sm:$0xff]  ;;  %v15_v4 = vand.u32 127, %v14_v1  ;;  %v32_v9 = vld [vmem:[%s182_s0 + $0x8] sm:$0xff] }
   0x4   :  { %vm17_vm1 = vcmp.lt.s32.totalorder %v15_v4, 64 }
   0x5   :  { %v18_v6 = vsel %vm17_vm1, %v13_v3, %v8_v0  ;;  %v27_v7 = vsel %vm17_vm1, %v123_v5, %v8_v0 }
   0x6   :  { %v137_v8 = vpack.c.bf16 %v27_v7, %v18_v6 }
   0x8   :  { %138 = vmatprep.subr.bf16.mxu0 %v137_v8 }
   0x9   :  { %140 = vmatpush3.bf16.msra.mxu0 %v137_v8 }
   0xc   :  { %135 = vmatmul.mubr.msk.f32.vlgmr.msra.gmra.mrb[0].mxu0 %vm35_vm0, %v32_v9 }
  0xdf   :  { %v136_v10 = vpop.f32.mrb[0].mxu0 }
  0xe0   :  { %118 = vst [vmem:[%s185_s3 + $0x8] sm:$0xff] %v136_v10  ;;  %v108_v11 = vpop.f32.mrb[1].mxu0 }
  0xe1   :  { %117 = vst [vmem:[%s185_s3] sm:$0xff] %v108_v11 }

</bundles_post_ra>
